<compile_context>
chip_gen: v5e
topology: v5e:2x2
jax: 0.10.0
libtpu: 0.0.40
codegen_flags: <defaults>
</compile_context>

<pallas_src>
import functools

import jax
import jax.numpy as jnp
from jax.experimental import pallas as pl
from jax.experimental.pallas import tpu as pltpu

_LANE = 128
_SUBLANE = 8


def _round_up(x, m):
    return (x + m - 1) // m * m


def _actor_kernel(ma_ref, x_ref, w1_ref, b1_ref, w2_ref, b2_ref, w3_ref,
                  b3_ref, out_ref):
    """Fused 3-layer MLP on one (TB, K_pad) batch tile (f32 MXU accumulation)."""
    max_action = ma_ref[0, 0]                 # SMEM scalar
    cdt = w1_ref.dtype                        # MXU input dtype (bf16 default)

    x = x_ref[...].astype(cdt)                # (TB, K_pad)

    # layer 1: Linear(K_pad, 256) + ReLU
    h = jnp.dot(x, w1_ref[...], preferred_element_type=jnp.float32)
    h = jnp.maximum(h + b1_ref[...], 0.0)

    # layer 2: Linear(256, 256) + ReLU
    h = jnp.dot(h.astype(cdt), w2_ref[...], preferred_element_type=jnp.float32)
    h = jnp.maximum(h + b2_ref[...], 0.0)

    # layer 3: Linear(256, N_pad) + tanh, scaled by max_action
    o = jnp.dot(h.astype(cdt), w3_ref[...], preferred_element_type=jnp.float32)
    out_ref[...] = (max_action * jnp.tanh(o + b3_ref[...])).astype(out_ref.dtype)


def prepare_actor_params(params, weights_dtype=jnp.bfloat16):
    """One-time (8,128)-aligned padding + dtype cast of the Actor weights.

    Call once (e.g. after each optimizer step), reuse across forward calls so
    the per-call path carries zero weight pad/convert HBM traffic.
    Returns (padded_params, a_dim).
    """
    w1, b1 = params["w1"], params["b1"]
    w2, b2 = params["w2"], params["b2"]
    w3, b3 = params["w3"], params["b3"]

    s_dim, hidden = w1.shape
    a_dim = w3.shape[1]
    k_pad = _round_up(s_dim, _LANE)           # MXU K of layer 1
    n_out = _round_up(a_dim, _LANE)           # lane-dense output width

    f32 = jnp.float32
    padded = dict(
        w1=jnp.zeros((k_pad, hidden), f32).at[:s_dim, :].set(w1).astype(weights_dtype),
        b1=b1.reshape(1, hidden).astype(f32),
        w2=w2.astype(weights_dtype),
        b2=b2.reshape(1, hidden).astype(f32),
        w3=jnp.zeros((hidden, n_out), f32).at[:, :a_dim].set(w3).astype(weights_dtype),
        b3=jnp.zeros((1, n_out), f32).at[:, :a_dim].set(b3.reshape(1, a_dim)),
    )
    return padded, a_dim


def _choose_batch_tiling(B, tile_b_max):
    """Pick (tb, b_pad, num_tiles): >=2 tiles when possible so the batch axis
    shards across both v7x TensorCores; tiles capped at tile_b_max rows."""
    b8 = _round_up(B, _SUBLANE)
    if b8 <= _SUBLANE:
        return b8, b8, 1
    tb = min(tile_b_max, _round_up(pl.cdiv(b8, 2), _SUBLANE))
    b_pad = _round_up(b8, tb)
    return tb, b_pad, b_pad // tb


def actor_forward(state, padded_params, max_action, *, a_dim, tile_b_max=512):
    """state: (B, s_dim) f32. padded_params: output of prepare_actor_params.

    Intended to be wrapped in jax.jit (static_argnames=("a_dim", "tile_b_max"))
    so the per-call state pad fuses with the pallas_call input copy.
    """
    p = padded_params
    B, s_dim = state.shape
    k_pad, hidden = p["w1"].shape
    n_out = p["w3"].shape[1]

    tb, b_pad, num_tiles = _choose_batch_tiling(B, tile_b_max)

    f32 = jnp.float32
    # Only per-call data movement: batch/K pad of the state (fused under jit).
    state_p = jnp.zeros((b_pad, k_pad), f32).at[:B, :s_dim].set(state.astype(f32))
    ma = jnp.full((1, 1), max_action, dtype=f32)   # SMEM scalar; no recompile on change

    batch_spec = lambda cols: pl.BlockSpec((tb, cols), lambda i: (i, 0))
    resident = lambda arr: pl.BlockSpec(arr.shape, lambda i: (0, 0))

    out_padded = pl.pallas_call(
        _actor_kernel,
        out_shape=jax.ShapeDtypeStruct((b_pad, n_out), f32),
        grid=(num_tiles,),
        in_specs=[
            pl.BlockSpec(memory_space=pltpu.MemorySpace.SMEM),  # max_action scalar
            batch_spec(k_pad),                                  # state tile (pipelined)
            resident(p["w1"]), resident(p["b1"]),
            resident(p["w2"]), resident(p["b2"]),
            resident(p["w3"]), resident(p["b3"]),
        ],
        out_specs=batch_spec(n_out),                            # lane-dense output tile
        compiler_params=pltpu.CompilerParams(
            dimension_semantics=("parallel",)),
    )(ma, state_p, p["w1"], p["b1"], p["w2"], p["b2"], p["w3"], p["b3"])

    return out_padded[:B, :a_dim]


def init_actor_params(key, s_dim, a_dim, hidden=256):
    """Deterministic init mimicking PyTorch Linear (U[-1/sqrt(fan_in), +])."""
    ks = jax.random.split(key, 6)

    def linear(kw, kb, fan_in, fan_out):
        bound = 1.0 / jnp.sqrt(fan_in)
        w = jax.random.uniform(kw, (fan_in, fan_out), jnp.float32, -bound, bound)
        b = jax.random.uniform(kb, (1, fan_out), jnp.float32, -bound, bound)
        return w, b

    w1, b1 = linear(ks[0], ks[1], s_dim, hidden)
    w2, b2 = linear(ks[2], ks[3], hidden, hidden)
    w3, b3 = linear(ks[4], ks[5], hidden, a_dim)
    return dict(w1=w1, b1=b1, w2=w2, b2=b2, w3=w3, b3=b3)


def actor_ref(state, params, max_action):
    """Pure-JAX f32 reference."""
    h = jnp.maximum(state @ params["w1"] + params["b1"], 0.0)
    h = jnp.maximum(h @ params["w2"] + params["b2"], 0.0)
    return max_action * jnp.tanh(h @ params["w3"] + params["b3"])


def actor_ref_lowp(state, params, max_action, dtype):
    """Reference mimicking the kernel's low-precision (bf16) matmul inputs."""
    dot = lambda x, w: jnp.dot(x.astype(dtype), w.astype(dtype),
                               preferred_element_type=jnp.float32)
    h = jnp.maximum(dot(state, params["w1"]) + params["b1"], 0.0)
    h = jnp.maximum(dot(h, params["w2"]) + params["b2"], 0.0)
    return max_action * jnp.tanh(dot(h, params["w3"]) + params["b3"])


if __name__ == "__main__":
    key = jax.random.PRNGKey(0)
    k_state, k_params, k_big = jax.random.split(key, 3)

    batch, s_dim, a_dim = 2, 17, 6      # small, arbitrary state/action dims
    max_action = 2.0

    state = jax.random.normal(k_state, (batch, s_dim), jnp.float32)
    params = init_actor_params(k_params, s_dim, a_dim)

    actor_fn = jax.jit(actor_forward, static_argnames=("a_dim", "tile_b_max"))

    # --- small-batch bit-strict f32 path (opt-in) ---
    padded_f32, adim = prepare_actor_params(params, weights_dtype=jnp.float32)
    out = actor_fn(state, padded_f32, max_action, a_dim=adim)
    out = jax.block_until_ready(out)
    ref = actor_ref(state, params, max_action)
    assert out.shape == (batch, a_dim)
    # atol slightly relaxed: MXU f32 accumulation order differs from XLA dot.
    assert jnp.allclose(out, ref, atol=1e-4, rtol=1e-4), (out, ref)
    assert bool(jnp.all(jnp.abs(out) <= max_action + 1e-6))

    # --- default bf16-weight path, larger batch (2 grid tiles -> both v7x TCs) ---
    padded_bf16, adim = prepare_actor_params(params)          # bf16 default
    big_state = jax.random.normal(k_big, (512, s_dim), jnp.float32)
    out_big = actor_fn(big_state, padded_bf16, max_action, a_dim=adim)
    out_big = jax.block_until_ready(out_big)
    ref_big = actor_ref_lowp(big_state, params, max_action, jnp.bfloat16)
    assert out_big.shape == (512, a_dim)
    assert jnp.allclose(out_big, ref_big, atol=2e-2, rtol=2e-2)
    assert bool(jnp.all(jnp.abs(out_big) <= max_action + 1e-6))

    # Repeat call on the same prepared params (the steady-state RL inference
    # path: no weight padding/casting work per call).
    out2 = jax.block_until_ready(actor_fn(state, padded_bf16, max_action, a_dim=adim))
    assert out2.shape == (batch, a_dim)

    print("KERNEL_OK")
</pallas_src>

<mosaic_0001>
module attributes {stable_mosaic.version = 11 : i64} {
  func.func @_actor_kernel(%arg0: i32, %arg1: memref<1x1xf32, #tpu.memory_space<smem>>, %arg2: memref<8x128xf32, #tpu.memory_space<vmem>>, %arg3: memref<128x256xf32, #tpu.memory_space<vmem>>, %arg4: memref<1x256xf32, #tpu.memory_space<vmem>>, %arg5: memref<256x256xf32, #tpu.memory_space<vmem>>, %arg6: memref<1x256xf32, #tpu.memory_space<vmem>>, %arg7: memref<256x128xf32, #tpu.memory_space<vmem>>, %arg8: memref<1x128xf32, #tpu.memory_space<vmem>>, %arg9: memref<8x128xf32, #tpu.memory_space<vmem>>) attributes {dimension_semantics = [#tpu.dimension_semantics<parallel>], iteration_bounds = array<i64: 1>, scalar_prefetch = 0 : i64, scratch_operands = 0 : i64, tpu.core_type = #tpu.core_type<tc>, window_params = [{transform_indices = @transform_0, window_bounds = array<i64: 1, 1>}, {transform_indices = @transform_1, window_bounds = array<i64: 8, 128>}, {pipeline_mode = #tpu.pipeline_mode<synchronous>, transform_indices = @transform_2, window_bounds = array<i64: 128, 256>}, {pipeline_mode = #tpu.pipeline_mode<synchronous>, transform_indices = @transform_3, window_bounds = array<i64: 1, 256>}, {pipeline_mode = #tpu.pipeline_mode<synchronous>, transform_indices = @transform_4, window_bounds = array<i64: 256, 256>}, {pipeline_mode = #tpu.pipeline_mode<synchronous>, transform_indices = @transform_5, window_bounds = array<i64: 1, 256>}, {pipeline_mode = #tpu.pipeline_mode<synchronous>, transform_indices = @transform_6, window_bounds = array<i64: 256, 128>}, {pipeline_mode = #tpu.pipeline_mode<synchronous>, transform_indices = @transform_7, window_bounds = array<i64: 1, 128>}, {transform_indices = @transform_8, window_bounds = array<i64: 8, 128>}]} {
    %c0 = arith.constant 0 : index
    %c0_0 = arith.constant 0 : index
    %0 = memref.load %arg1[%c0, %c0_0] : memref<1x1xf32, #tpu.memory_space<smem>>
    %c0_1 = arith.constant 0 : index
    %c0_2 = arith.constant 0 : index
    %1 = vector.load %arg2[%c0_1, %c0_2] : memref<8x128xf32, #tpu.memory_space<vmem>>, vector<8x128xf32>
    %c0_3 = arith.constant 0 : index
    %c0_4 = arith.constant 0 : index
    %2 = vector.load %arg3[%c0_3, %c0_4] : memref<128x256xf32, #tpu.memory_space<vmem>>, vector<128x256xf32>
    %cst = arith.constant dense<0.000000e+00> : vector<8x256xf32>
    %3 = tpu.matmul %1, %2, %cst {dimension_numbers = #tpu.dot_dimension_numbers<[1], [0], [0], [1], [0, 0, 1, 1], [], []>} : vector<8x128xf32>, vector<128x256xf32>, vector<8x256xf32> -> vector<8x256xf32>
    %c0_5 = arith.constant 0 : index
    %c0_6 = arith.constant 0 : index
    %4 = vector.load %arg4[%c0_5, %c0_6] : memref<1x256xf32, #tpu.memory_space<vmem>>, vector<1x256xf32>
    %5 = vector.broadcast %4 : vector<1x256xf32> to vector<8x256xf32>
    %6 = arith.addf %3, %5 : vector<8x256xf32>
    %cst_7 = arith.constant 0.000000e+00 : f32
    %7 = vector.broadcast %cst_7 : f32 to vector<8x256xf32>
    %8 = arith.maximumf %6, %7 : vector<8x256xf32>
    %c0_8 = arith.constant 0 : index
    %c0_9 = arith.constant 0 : index
    %9 = vector.load %arg5[%c0_8, %c0_9] : memref<256x256xf32, #tpu.memory_space<vmem>>, vector<256x256xf32>
    %cst_10 = arith.constant dense<0.000000e+00> : vector<8x256xf32>
    %10 = tpu.matmul %8, %9, %cst_10 {dimension_numbers = #tpu.dot_dimension_numbers<[1], [0], [0], [1], [0, 0, 1, 1], [], []>} : vector<8x256xf32>, vector<256x256xf32>, vector<8x256xf32> -> vector<8x256xf32>
    %c0_11 = arith.constant 0 : index
    %c0_12 = arith.constant 0 : index
    %11 = vector.load %arg6[%c0_11, %c0_12] : memref<1x256xf32, #tpu.memory_space<vmem>>, vector<1x256xf32>
    %12 = vector.broadcast %11 : vector<1x256xf32> to vector<8x256xf32>
    %13 = arith.addf %10, %12 : vector<8x256xf32>
    %cst_13 = arith.constant 0.000000e+00 : f32
    %14 = vector.broadcast %cst_13 : f32 to vector<8x256xf32>
    %15 = arith.maximumf %13, %14 : vector<8x256xf32>
    %c0_14 = arith.constant 0 : index
    %c0_15 = arith.constant 0 : index
    %16 = vector.load %arg7[%c0_14, %c0_15] : memref<256x128xf32, #tpu.memory_space<vmem>>, vector<256x128xf32>
    %cst_16 = arith.constant dense<0.000000e+00> : vector<8x128xf32>
    %17 = tpu.matmul %15, %16, %cst_16 {dimension_numbers = #tpu.dot_dimension_numbers<[1], [0], [0], [1], [0, 0, 1, 1], [], []>} : vector<8x256xf32>, vector<256x128xf32>, vector<8x128xf32> -> vector<8x128xf32>
    %c0_17 = arith.constant 0 : index
    %c0_18 = arith.constant 0 : index
    %18 = vector.load %arg8[%c0_17, %c0_18] : memref<1x128xf32, #tpu.memory_space<vmem>>, vector<1x128xf32>
    %19 = vector.broadcast %18 : vector<1x128xf32> to vector<8x128xf32>
    %20 = arith.addf %17, %19 : vector<8x128xf32>
    %21 = math.tanh %20 : vector<8x128xf32>
    %22 = vector.broadcast %0 : f32 to vector<8x128xf32>
    %23 = arith.mulf %22, %21 : vector<8x128xf32>
    %c0_19 = arith.constant 0 : index
    %c0_20 = arith.constant 0 : index
    %24 = vector.load %arg9[%c0_19, %c0_20] : memref<8x128xf32, #tpu.memory_space<vmem>>, vector<8x128xf32>
    tpu.vector_store %arg9[%c0_19, %c0_20], %23 {strides = array<i32>} : memref<8x128xf32, #tpu.memory_space<vmem>>, vector<8x128xf32>,
    return
  }
  func.func @transform_0(%arg0: i32) -> (i32, i32) {
    %c0_i32 = arith.constant 0 : i32
    %c0_i32_0 = arith.constant 0 : i32
    %c0_i32_1 = arith.constant 0 : i32
    return %c0_i32, %c0_i32_0 : i32, i32
  }
  func.func @transform_1(%arg0: i32) -> (i32, i32) {
    %c0_i32 = arith.constant 0 : i32
    %c0_i32_0 = arith.constant 0 : i32
    return %arg0, %c0_i32 : i32, i32
  }
  func.func @transform_2(%arg0: i32) -> (i32, i32) {
    %c0_i32 = arith.constant 0 : i32
    %c0_i32_0 = arith.constant 0 : i32
    %c0_i32_1 = arith.constant 0 : i32
    return %c0_i32, %c0_i32_0 : i32, i32
  }
  func.func @transform_3(%arg0: i32) -> (i32, i32) {
    %c0_i32 = arith.constant 0 : i32
    %c0_i32_0 = arith.constant 0 : i32
    %c0_i32_1 = arith.constant 0 : i32
    return %c0_i32, %c0_i32_0 : i32, i32
  }
  func.func @transform_4(%arg0: i32) -> (i32, i32) {
    %c0_i32 = arith.constant 0 : i32
    %c0_i32_0 = arith.constant 0 : i32
    %c0_i32_1 = arith.constant 0 : i32
    return %c0_i32, %c0_i32_0 : i32, i32
  }
  func.func @transform_5(%arg0: i32) -> (i32, i32) {
    %c0_i32 = arith.constant 0 : i32
    %c0_i32_0 = arith.constant 0 : i32
    %c0_i32_1 = arith.constant 0 : i32
    return %c0_i32, %c0_i32_0 : i32, i32
  }
  func.func @transform_6(%arg0: i32) -> (i32, i32) {
    %c0_i32 = arith.constant 0 : i32
    %c0_i32_0 = arith.constant 0 : i32
    %c0_i32_1 = arith.constant 0 : i32
    return %c0_i32, %c0_i32_0 : i32, i32
  }
  func.func @transform_7(%arg0: i32) -> (i32, i32) {
    %c0_i32 = arith.constant 0 : i32
    %c0_i32_0 = arith.constant 0 : i32
    %c0_i32_1 = arith.constant 0 : i32
    return %c0_i32, %c0_i32_0 : i32, i32
  }
  func.func @transform_8(%arg0: i32) -> (i32, i32) {
    %c0_i32 = arith.constant 0 : i32
    %c0_i32_0 = arith.constant 0 : i32
    return %arg0, %c0_i32 : i32, i32
  }
}

</mosaic_0001>

<bundles_post_ra>
// kernel: actor_forward.1
= control target key start
LH: loop header
LB: loop body
LE: loop exit
PB: predicated region body
PF: predicated region fallthrough
CT: control target
= control target key end

     0   :  { %14 = vsyncpa [#allocation4], 0  ;;  %s562_s0 = inlined_call_operand.<no memory space> [shape: f32[1,1], index: 0, kind: input, shape index: {}]   ;;  %s563_s1 = inlined_call_operand.vmem [shape: f32[8,128], index: 1, kind: input, shape index: {}]   ;;  %s564_s2 = inlined_call_operand.hbm [shape: f32[128,256], index: 2, kind: input, shape index: {}]   ;;  %s565_s3 = inlined_call_operand.vmem [shape: f32[1,256], index: 3, kind: input, shape index: {}]   ;;  %s566_s4 = inlined_call_operand.hbm [shape: f32[256,256], index: 4, kind: input, shape index: {}]   ;;  %s567_s5 = inlined_call_operand.vmem [shape: f32[1,256], index: 5, kind: input, shape index: {}]   ;;  %s568_s6 = inlined_call_operand.hbm [shape: f32[256,128], index: 6, kind: input, shape index: {}]   ;;  %s569_s7 = inlined_call_operand.vmem [shape: f32[1,128], index: 7, kind: input, shape index: {}]   ;;  %s570_s8 = inlined_call_operand.vmem [shape: f32[8,128], index: 8, kind: output, shape index: {}]  }
   0x1   :  { %15 = vsyncpa [#allocation6], 0  ;;  %s39_s29 = sshll.u32 %s566_s4, 4  ;;  %s483_s30 = smov [#allocation5]   ;;  %s40_s29 = int_to_ptr.hbm [resolvable:$true] %s39_s29 }
   0x2   :  { %s41_s9 = sshll.u32 %s483_s30, 4  ;;  %s24_s12 = sshll.u32 %s564_s2, 4  ;;  %s42_s9 = int_to_ptr.vmem [resolvable:$true] %s41_s9  ;;  %s25_s12 = int_to_ptr.hbm [resolvable:$true] %s24_s12 }
   0x3   :  { %s484_s13 = smov 256   ;;  %s485_s14 = smov 16  }
   0x4   :  { %47 = dma.hbm_to_vmem [thread:$0]  %s40_s29, 8192, %s42_s9, [#allocation6], %s484_s13, %s484_s13, %s485_s14  }
   0x5   :  { %s486_s15 = smov [#allocation3]   ;;  %s54_s19 = sshll.u32 %s568_s6, 4  ;;  %s55_s19 = int_to_ptr.hbm [resolvable:$true] %s54_s19 }
   0x6   :  { %s26_s16 = sshll.u32 %s486_s15, 4  ;;  %s487_s4 = smov [#allocation7]   ;;  %s27_s16 = int_to_ptr.vmem [resolvable:$true] %s26_s16 }
   0x7   :  { %32 = dma.hbm_to_vmem [thread:$0]  %s25_s12, 4096, %s27_s16, [#allocation4], %s484_s13, %s484_s13, %s485_s14  }
   0x8   :  { %s56_s20 = sshll.u32 %s487_s4, 4  ;;  %s488_s21 = smov 128   ;;  %s57_s20 = int_to_ptr.vmem [resolvable:$true] %s56_s20 }
   0x9   :  { %s489_s22 = smov 8  }
   0xa   :  { %62 = dma.hbm_to_vmem [thread:$0]  %s55_s19, 4096, %s57_s20, [#allocation6], %s488_s21, %s488_s21, %s489_s22  }
   0xb   :  { %479 = dma.done.wait [#allocation4], 4096  }
   0xc   :  { %480 = vsyncadd [#allocation4], 4294963200 }
   0xd   :  { %481 = dma.done.wait [#allocation6], 12288  }
   0xe   :  { %482 = vsyncadd [#allocation6], 4294955008  ;;  %v109_v0 = vld [vmem:[#allocation3 + $0xf0] sm:$0xff]  ;;  %v107_v1 = vld [vmem:[#allocation3 + $0xe0] sm:$0xff] }
   0xf   :  { %v110_v2 = vld [vmem:[#allocation3 + $0xf8] sm:$0xff]  ;;  %117 = vmatpush.msra.mxu0 %v109_v0  ;;  %v108_v3 = vld [vmem:[#allocation3 + $0xe8] sm:$0xff]  ;;  %v105_v4 = vld [vmem:[#allocation3 + $0xd0] sm:$0xff] }
  0x10   :  { %137 = vmatpush.msra.mxu1 %v110_v2  ;;  %v106_v5 = vld [vmem:[#allocation3 + $0xd8] sm:$0xff]  ;;  %v103_v6 = vld [vmem:[#allocation3 + $0xc0] sm:$0xff]  ;;  %v104_v7 = vld [vmem:[#allocation3 + $0xc8] sm:$0xff] }
  0x11   :  { %118 = vmatpush.msra.mxu0 %v107_v1  ;;  %v101_v8 = vld [vmem:[#allocation3 + $0xb0] sm:$0xff]  ;;  %v102_v9 = vld [vmem:[#allocation3 + $0xb8] sm:$0xff]  ;;  %v99_v10 = vld [vmem:[#allocation3 + $0xa0] sm:$0xff] }
  0x12   :  { %138 = vmatpush.msra.mxu1 %v108_v3  ;;  %v100_v11 = vld [vmem:[#allocation3 + $0xa8] sm:$0xff]  ;;  %v97_v12 = vld [vmem:[#allocation3 + $0x90] sm:$0xff]  ;;  %v98_v13 = vld [vmem:[#allocation3 + $0x98] sm:$0xff] }
  0x13   :  { %119 = vmatpush.msra.mxu0 %v105_v4  ;;  %v189_v14 = vld [vmem:[#allocation5 + $0xf0] sm:$0xff]  ;;  %v187_v15 = vld [vmem:[#allocation5 + $0xe0] sm:$0xff]  ;;  %v96_v17 = vld [vmem:[#allocation3 + $0x88] sm:$0xff] }
  0x14   :  { %139 = vmatpush.msra.mxu1 %v106_v5  ;;  %v95_v16 = vld [vmem:[#allocation3 + $0x80] sm:$0xff]  ;;  %229 = vmatpush.msra.mxu2 %v189_v14  ;;  %v221_v18 = vld [vmem:[#allocation5 + $0x1f0] sm:$0xff]  ;;  %v94_v22 = vld [vmem:[#allocation3 + $0x78] sm:$0xff] }
  0x15   :  { %120 = vmatpush.msra.mxu0 %v103_v6  ;;  %v185_v19 = vld [vmem:[#allocation5 + $0xd0] sm:$0xff]  ;;  %v219_v20 = vld [vmem:[#allocation5 + $0x1e0] sm:$0xff]  ;;  %249 = vmatpush.msra.mxu3 %v221_v18  ;;  %v92_v26 = vld [vmem:[#allocation3 + $0x68] sm:$0xff] }
  0x16   :  { %140 = vmatpush.msra.mxu1 %v104_v7  ;;  %v93_v21 = vld [vmem:[#allocation3 + $0x70] sm:$0xff]  ;;  %230 = vmatpush.msra.mxu2 %v187_v15  ;;  %v183_v23 = vld [vmem:[#allocation5 + $0xc0] sm:$0xff]  ;;  %v90_v30 = vld [vmem:[#allocation3 + $0x58] sm:$0xff] }
  0x17   :  { %121 = vmatpush.msra.mxu0 %v101_v8  ;;  %v217_v24 = vld [vmem:[#allocation5 + $0x1d0] sm:$0xff]  ;;  %v91_v25 = vld [vmem:[#allocation3 + $0x60] sm:$0xff]  ;;  %250 = vmatpush.msra.mxu3 %v219_v20  ;;  %v88_v34 = vld [vmem:[#allocation3 + $0x48] sm:$0xff] }
  0x18   :  { %141 = vmatpush.msra.mxu1 %v102_v9  ;;  %231 = vmatpush.msra.mxu2 %v185_v19  ;;  %v181_v27 = vld [vmem:[#allocation5 + $0xb0] sm:$0xff]  ;;  %v215_v28 = vld [vmem:[#allocation5 + $0x1c0] sm:$0xff]  ;;  %v86_v38 = vld [vmem:[#allocation3 + $0x38] sm:$0xff] }
  0x19   :  { %122 = vmatpush.msra.mxu0 %v99_v10  ;;  %v89_v29 = vld [vmem:[#allocation3 + $0x50] sm:$0xff]  ;;  %251 = vmatpush.msra.mxu3 %v217_v24  ;;  %v179_v31 = vld [vmem:[#allocation5 + $0xa0] sm:$0xff]  ;;  %v84_v42 = vld [vmem:[#allocation3 + $0x28] sm:$0xff] }
  0x1a   :  { %142 = vmatpush.msra.mxu1 %v100_v11  ;;  %232 = vmatpush.msra.mxu2 %v183_v23  ;;  %v213_v32 = vld [vmem:[#allocation5 + $0x1b0] sm:$0xff]  ;;  %v87_v33 = vld [vmem:[#allocation3 + $0x40] sm:$0xff]  ;;  %v82_v46 = vld [vmem:[#allocation3 + $0x18] sm:$0xff] }
  0x1b   :  { %123 = vmatpush.msra.mxu0 %v97_v12  ;;  %252 = vmatpush.msra.mxu3 %v215_v28  ;;  %v177_v35 = vld [vmem:[#allocation5 + $0x90] sm:$0xff]  ;;  %v211_v36 = vld [vmem:[#allocation5 + $0x1a0] sm:$0xff]  ;;  %v80_v50 = vld [vmem:[#allocation3 + $0x8] sm:$0xff] }
  0x1c   :  { %143 = vmatpush.msra.mxu1 %v98_v13  ;;  %233 = vmatpush.msra.mxu2 %v181_v27  ;;  %v85_v37 = vld [vmem:[#allocation3 + $0x30] sm:$0xff]  ;;  %v175_v39 = vld [vmem:[#allocation5 + $0x80] sm:$0xff]  ;;  %v190_v52 = vld [vmem:[#allocation5 + $0xf8] sm:$0xff] }
  0x1d   :  { %124 = vmatpush.msra.mxu0 %v95_v16  ;;  %253 = vmatpush.msra.mxu3 %v213_v32  ;;  %v209_v40 = vld [vmem:[#allocation5 + $0x190] sm:$0xff]  ;;  %v83_v41 = vld [vmem:[#allocation3 + $0x20] sm:$0xff]  ;;  %v222_v53 = vld [vmem:[#allocation5 + $0x1f8] sm:$0xff] }
  0x1e   :  { %144 = vmatpush.msra.mxu1 %v96_v17  ;;  %234 = vmatpush.msra.mxu2 %v179_v31  ;;  %v173_v43 = vld [vmem:[#allocation5 + $0x70] sm:$0xff]  ;;  %v207_v44 = vld [vmem:[#allocation5 + $0x180] sm:$0xff]  ;;  %v188_v56 = vld [vmem:[#allocation5 + $0xe8] sm:$0xff] }
  0x1f   :  { %125 = vmatpush.msra.mxu0 %v93_v21  ;;  %254 = vmatpush.msra.mxu3 %v211_v36  ;;  %v81_v45 = vld [vmem:[#allocation3 + $0x10] sm:$0xff]  ;;  %v171_v47 = vld [vmem:[#allocation5 + $0x60] sm:$0xff]  ;;  %v220_v57 = vld [vmem:[#allocation5 + $0x1e8] sm:$0xff] }
  0x20   :  { %145 = vmatpush.msra.mxu1 %v94_v22  ;;  %235 = vmatpush.msra.mxu2 %v177_v35  ;;  %v205_v48 = vld [vmem:[#allocation5 + $0x170] sm:$0xff]  ;;  %v79_v49 = vld [vmem:[#allocation3] sm:$0xff]  ;;  %v186_v60 = vld [vmem:[#allocation5 + $0xd8] sm:$0xff] }
  0x21   :  { %126 = vmatpush.msra.mxu0 %v91_v25  ;;  %255 = vmatpush.msra.mxu3 %v209_v40  ;;  %v78_v51 = vld [vmem:[%s563_s1] sm:$0xff]  ;;  %v169_v54 = vld [vmem:[#allocation5 + $0x50] sm:$0xff]  ;;  %v218_v61 = vld [vmem:[#allocation5 + $0x1d8] sm:$0xff] }
  0x22   :  { %146 = vmatpush.msra.mxu1 %v92_v26  ;;  %236 = vmatpush.msra.mxu2 %v175_v39  ;;  %v203_v55 = vld [vmem:[#allocation5 + $0x160] sm:$0xff]  ;;  %v201_v59 = vld [vmem:[#allocation5 + $0x150] sm:$0xff]  ;;  %v184_v0 = vld [vmem:[#allocation5 + $0xc8] sm:$0xff] }
  0x23   :  { %127 = vmatpush.msra.mxu0 %v89_v29  ;;  %256 = vmatpush.msra.mxu3 %v207_v44  ;;  %v167_v58 = vld [vmem:[#allocation5 + $0x40] sm:$0xff]  ;;  %v165_v62 = vld [vmem:[#allocation5 + $0x30] sm:$0xff]  ;;  %v216_v1 = vld [vmem:[#allocation5 + $0x1c8] sm:$0xff] }
  0x24   :  { %147 = vmatpush.msra.mxu1 %v90_v30  ;;  %237 = vmatpush.msra.mxu2 %v173_v43  ;;  %v199_v63 = vld [vmem:[#allocation5 + $0x140] sm:$0xff]  ;;  %v182_v2 = vld [vmem:[#allocation5 + $0xb8] sm:$0xff]  ;;  %v180_v4 = vld [vmem:[#allocation5 + $0xa8] sm:$0xff] }
  0x25   :  { %128 = vmatpush.msra.mxu0 %v87_v33  ;;  %257 = vmatpush.msra.mxu3 %v205_v48  ;;  %v214_v3 = vld [vmem:[#allocation5 + $0x1b8] sm:$0xff]  ;;  %v212_v5 = vld [vmem:[#allocation5 + $0x1a8] sm:$0xff]  ;;  %v163_v19 = vld [vmem:[#allocation5 + $0x20] sm:$0xff] }
  0x26   :  { %148 = vmatpush.msra.mxu1 %v88_v34  ;;  %238 = vmatpush.msra.mxu2 %v171_v47  ;;  %v178_v6 = vld [vmem:[#allocation5 + $0x98] sm:$0xff]  ;;  %v176_v8 = vld [vmem:[#allocation5 + $0x88] sm:$0xff]  ;;  %v197_v20 = vld [vmem:[#allocation5 + $0x130] sm:$0xff] }
  0x27   :  { %129 = vmatpush.msra.mxu0 %v85_v37  ;;  %258 = vmatpush.msra.mxu3 %v203_v55  ;;  %v210_v7 = vld [vmem:[#allocation5 + $0x198] sm:$0xff]  ;;  %v208_v9 = vld [vmem:[#allocation5 + $0x188] sm:$0xff]  ;;  %v161_v23 = vld [vmem:[#allocation5 + $0x10] sm:$0xff] }
  0x28   :  { %149 = vmatpush.msra.mxu1 %v86_v38  ;;  %239 = vmatpush.msra.mxu2 %v169_v54  ;;  %v174_v10 = vld [vmem:[#allocation5 + $0x78] sm:$0xff]  ;;  %v172_v12 = vld [vmem:[#allocation5 + $0x68] sm:$0xff]  ;;  %v195_v24 = vld [vmem:[#allocation5 + $0x120] sm:$0xff] }
  0x29   :  { %130 = vmatpush.msra.mxu0 %v83_v41  ;;  %259 = vmatpush.msra.mxu3 %v201_v59  ;;  %v206_v11 = vld [vmem:[#allocation5 + $0x178] sm:$0xff]  ;;  %v204_v13 = vld [vmem:[#allocation5 + $0x168] sm:$0xff]  ;;  %v159_v27 = vld [vmem:[#allocation5] sm:$0xff] }
  0x2a   :  { %150 = vmatpush.msra.mxu1 %v84_v42  ;;  %240 = vmatpush.msra.mxu2 %v167_v58  ;;  %v170_v14 = vld [vmem:[#allocation5 + $0x58] sm:$0xff]  ;;  %v168_v16 = vld [vmem:[#allocation5 + $0x48] sm:$0xff]  ;;  %v193_v28 = vld [vmem:[#allocation5 + $0x110] sm:$0xff] }
  0x2b   :  { %131 = vmatpush.msra.mxu0 %v81_v45  ;;  %260 = vmatpush.msra.mxu3 %v199_v63  ;;  %v202_v15 = vld [vmem:[#allocation5 + $0x158] sm:$0xff]  ;;  %v200_v17 = vld [vmem:[#allocation5 + $0x148] sm:$0xff]  ;;  %v191_v31 = vld [vmem:[#allocation5 + $0x100] sm:$0xff] }
  0x2c   :  { %151 = vmatpush.msra.mxu1 %v82_v46  ;;  %241 = vmatpush.msra.mxu2 %v165_v62  ;;  %v166_v18 = vld [vmem:[#allocation5 + $0x38] sm:$0xff]  ;;  %v164_v21 = vld [vmem:[#allocation5 + $0x28] sm:$0xff]  ;;  %v341_v34 = vld [vmem:[#allocation7 + $0xf0] sm:$0xff] }
  0x2d   :  { %132 = vmatpush.msra.mxu0 %v79_v49  ;;  %261 = vmatpush.msra.mxu3 %v197_v20  ;;  %v198_v22 = vld [vmem:[#allocation5 + $0x138] sm:$0xff]  ;;  %v196_v26 = vld [vmem:[#allocation5 + $0x128] sm:$0xff]  ;;  %v325_v36 = vld [vmem:[#allocation7 + $0x70] sm:$0xff] }
  0x2e   :  { %152 = vmatpush.msra.mxu1 %v80_v50  ;;  %133 = vmatmul.f32.vlgmr.msra.gmra.mxu0 %v78_v51  ;;  %v162_v25 = vld [vmem:[#allocation5 + $0x18] sm:$0xff]  ;;  %v160_v29 = vld [vmem:[#allocation5 + $0x8] sm:$0xff]  ;;  %v339_v39 = vld [vmem:[#allocation7 + $0xe0] sm:$0xff] }
  0x2f   :  { %153 = vmatmul.f32.vlgmr.msra.gmra.mxu1 %v78_v51  ;;  %269 = vmatpush.msrb.mxu0 %v190_v52  ;;  %v194_v30 = vld [vmem:[#allocation5 + $0x118] sm:$0xff]  ;;  %v192_v32 = vld [vmem:[#allocation5 + $0x108] sm:$0xff]  ;;  %v323_v40 = vld [vmem:[#allocation7 + $0x60] sm:$0xff] }
  0x30   :  { %289 = vmatpush.msrb.mxu1 %v222_v53  ;;  %242 = vmatpush.msra.mxu2 %v163_v19  ;;  %v342_v33 = vld [vmem:[#allocation7 + $0xf8] sm:$0xff]  ;;  %v340_v37 = vld [vmem:[#allocation7 + $0xe8] sm:$0xff]  ;;  %v337_v43 = vld [vmem:[#allocation7 + $0xd0] sm:$0xff] }
  0x31   :  { %270 = vmatpush.msrb.mxu0 %v188_v56  ;;  %262 = vmatpush.msra.mxu3 %v195_v24  ;;  %v326_v35 = vld [vmem:[#allocation7 + $0x78] sm:$0xff]  ;;  %v324_v38 = vld [vmem:[#allocation7 + $0x68] sm:$0xff]  ;;  %v321_v44 = vld [vmem:[#allocation7 + $0x50] sm:$0xff] }
  0x32   :  { %290 = vmatpush.msrb.mxu1 %v220_v57  ;;  %243 = vmatpush.msra.mxu2 %v161_v23  ;;  %v338_v41 = vld [vmem:[#allocation7 + $0xd8] sm:$0xff]  ;;  %v336_v45 = vld [vmem:[#allocation7 + $0xc8] sm:$0xff]  ;;  %v335_v47 = vld [vmem:[#allocation7 + $0xc0] sm:$0xff] }
  0x33   :  { %271 = vmatpush.msrb.mxu0 %v186_v60  ;;  %263 = vmatpush.msra.mxu3 %v193_v28  ;;  %v322_v42 = vld [vmem:[#allocation7 + $0x58] sm:$0xff]  ;;  %v320_v46 = vld [vmem:[#allocation7 + $0x48] sm:$0xff]  ;;  %v319_v48 = vld [vmem:[#allocation7 + $0x40] sm:$0xff]  ;;  %v388_v28 = vstv %s562_s0 }
  0x34   :  { %291 = vmatpush.msrb.mxu1 %v218_v61  ;;  %244 = vmatpush.msra.mxu2 %v159_v27  ;;  %v334_v49 = vld [vmem:[#allocation7 + $0xb8] sm:$0xff]  ;;  %v333_v51 = vld [vmem:[#allocation7 + $0xb0] sm:$0xff]  ;;  %v332_v52 = vld [vmem:[#allocation7 + $0xa8] sm:$0xff] }
  0x35   :  { %272 = vmatpush.msrb.mxu0 %v184_v0  ;;  %264 = vmatpush.msra.mxu3 %v191_v31  ;;  %v318_v50 = vld [vmem:[#allocation7 + $0x38] sm:$0xff]  ;;  %v111_v53 = vld [vmem:[%s565_s3] sm:$0x3]  ;;  %v317_v63 = vld [vmem:[#allocation7 + $0x30] sm:$0xff] }
  0x36   :  { %292 = vmatpush.msrb.mxu1 %v216_v1  ;;  %347 = vmatpush.msrb.mxu2 %v326_v35  ;;  %v331_v54 = vld [vmem:[#allocation7 + $0xa0] sm:$0xff]  ;;  %v113_v55 = vperm.slane %v111_v53, 0  ;;  %v114_v56 = vperm.slane %v111_v53, 1  ;;  %v330_v0 = vld [vmem:[#allocation7 + $0x98] sm:$0xff]  ;;  %v316_v1 = vld [vmem:[#allocation7 + $0x28] sm:$0xff] }
  0x37   :  { %273 = vmatpush.msrb.mxu0 %v182_v2  ;;  %367 = vmatpush.msrb.mxu3 %v342_v33  ;;  %v329_v2 = vld [vmem:[#allocation7 + $0x90] sm:$0xff]  ;;  %v404_v23 = vld [vmem:[%s569_s7] ss:$0 sm:$0xff] }
  0x38   :  { %293 = vmatpush.msrb.mxu1 %v214_v3  ;;  %348 = vmatpush.msrb.mxu2 %v325_v36  ;;  %v315_v3 = vld [vmem:[#allocation7 + $0x20] sm:$0xff] }
  0x39   :  { %274 = vmatpush.msrb.mxu0 %v180_v4  ;;  %368 = vmatpush.msrb.mxu3 %v341_v34  ;;  %v328_v4 = vld [vmem:[#allocation7 + $0x88] sm:$0xff] }
  0x3a   :  { %294 = vmatpush.msrb.mxu1 %v212_v5  ;;  %349 = vmatpush.msrb.mxu2 %v324_v38  ;;  %v314_v5 = vld [vmem:[#allocation7 + $0x18] sm:$0xff] }
  0x3b   :  { %275 = vmatpush.msrb.mxu0 %v178_v6  ;;  %369 = vmatpush.msrb.mxu3 %v340_v37  ;;  %v327_v6 = vld [vmem:[#allocation7 + $0x80] sm:$0xff] }
  0x3c   :  { %295 = vmatpush.msrb.mxu1 %v210_v7  ;;  %350 = vmatpush.msrb.mxu2 %v323_v40  ;;  %v313_v7 = vld [vmem:[#allocation7 + $0x10] sm:$0xff] }
  0x3d   :  { %276 = vmatpush.msrb.mxu0 %v176_v8  ;;  %370 = vmatpush.msrb.mxu3 %v339_v39  ;;  %v312_v8 = vld [vmem:[#allocation7 + $0x8] sm:$0xff] }
  0x3e   :  { %296 = vmatpush.msrb.mxu1 %v208_v9  ;;  %351 = vmatpush.msrb.mxu2 %v322_v42  ;;  %v311_v9 = vld [vmem:[#allocation7] sm:$0xff] }
  0x3f   :  { %277 = vmatpush.msrb.mxu0 %v174_v10  ;;  %371 = vmatpush.msrb.mxu3 %v338_v41  ;;  %v223_v10 = vld [vmem:[%s567_s5] sm:$0x3] }
  0x40   :  { %297 = vmatpush.msrb.mxu1 %v206_v11  ;;  %352 = vmatpush.msrb.mxu2 %v321_v44  ;;  %v226_v11 = vperm.slane %v223_v10, 1 }
  0x41   :  { %278 = vmatpush.msrb.mxu0 %v172_v12  ;;  %372 = vmatpush.msrb.mxu3 %v337_v43 }
  0x42   :  { %298 = vmatpush.msrb.mxu1 %v204_v13  ;;  %353 = vmatpush.msrb.mxu2 %v320_v46 }
  0x43   :  { %279 = vmatpush.msrb.mxu0 %v170_v14  ;;  %373 = vmatpush.msrb.mxu3 %v336_v45 }
  0x44   :  { %299 = vmatpush.msrb.mxu1 %v202_v15  ;;  %354 = vmatpush.msrb.mxu2 %v319_v48 }
  0x45   :  { %280 = vmatpush.msrb.mxu0 %v168_v16  ;;  %374 = vmatpush.msrb.mxu3 %v335_v47  ;;  %v225_v16 = vperm.slane %v223_v10, 0 }
  0x46   :  { %300 = vmatpush.msrb.mxu1 %v200_v17  ;;  %355 = vmatpush.msrb.mxu2 %v318_v50 }
  0x47   :  { %281 = vmatpush.msrb.mxu0 %v166_v18  ;;  %375 = vmatpush.msrb.mxu3 %v334_v49 }
  0x48   :  { %301 = vmatpush.msrb.mxu1 %v198_v22  ;;  %356 = vmatpush.msrb.mxu2 %v317_v63 }
  0x49   :  { %282 = vmatpush.msrb.mxu0 %v164_v21  ;;  %376 = vmatpush.msrb.mxu3 %v333_v51 }
  0x4a   :  { %302 = vmatpush.msrb.mxu1 %v196_v26  ;;  %357 = vmatpush.msrb.mxu2 %v316_v1 }
  0x4b   :  { %283 = vmatpush.msrb.mxu0 %v162_v25  ;;  %377 = vmatpush.msrb.mxu3 %v332_v52 }
  0x4c   :  { %303 = vmatpush.msrb.mxu1 %v194_v30  ;;  %358 = vmatpush.msrb.mxu2 %v315_v3 }
  0x4d   :  { %284 = vmatpush.msrb.mxu0 %v160_v29  ;;  %378 = vmatpush.msrb.mxu3 %v331_v54 }
  0x4e   :  { %304 = vmatpush.msrb.mxu1 %v192_v32  ;;  %359 = vmatpush.msrb.mxu2 %v314_v5 }
  0x4f   :  { %379 = vmatpush.msrb.mxu3 %v330_v0 }
  0x50   :  { %360 = vmatpush.msrb.mxu2 %v313_v7 }
  0x51   :  { %380 = vmatpush.msrb.mxu3 %v329_v2 }
  0x52   :  { %361 = vmatpush.msrb.mxu2 %v312_v8 }
  0x53   :  { %381 = vmatpush.msrb.mxu3 %v328_v4 }
  0x54   :  { %362 = vmatpush.msrb.mxu2 %v311_v9 }
  0x55   :  { %382 = vmatpush.msrb.mxu3 %v327_v6 }
  0xab   :  { %v134_v57 = vpop.f32.mrf.mxu0 }
  0xac   :  { %v154_v58 = vpop.f32.mrf.mxu1  ;;  %v135_v59 = vadd.f32 %v134_v57, %v113_v55 }
  0xad   :  { %v155_v60 = vadd.f32 %v154_v58, %v114_v56 }
  0xae   :  { %v157_v61 = vmax.f32 %v135_v59, 0.0 }
  0xaf   :  { %v158_v62 = vmax.f32 %v155_v60, 0.0 }
  0xb0   :  { %245 = vmatmul.f32.vlgmr.msra.gmra.mxu2 %v157_v61  ;;  %285 = vmatmul.f32.vlgmr.msrb.gmra.mxu0 %v157_v61 }
  0xb1   :  { %265 = vmatmul.f32.vlgmr.msra.gmra.mxu3 %v158_v62  ;;  %305 = vmatmul.f32.vlgmr.msrb.gmra.mxu1 %v158_v62 }
 0x12d   :  { %v286_v12 = vpop.f32.mrf.mxu0 }
 0x12e   :  { %v287_v13 = vadd.f32 %v286_v12, %v226_v11  ;;  %v306_v14 = vpop.f32.mrf.mxu1 }
 0x130   :  { %v307_v15 = vadd.f32 %v306_v14, %v287_v13 }
 0x132   :  { %v310_v17 = vmax.f32 %v307_v15, 0.0 }
 0x133   :  { %v246_v18 = vpop.f32.mrf.mxu2 }
 0x134   :  { %v247_v19 = vadd.f32 %v246_v18, %v225_v16  ;;  %383 = vmatmul.f32.vlgmr.msrb.gmra.mxu3 %v310_v17  ;;  %v266_v20 = vpop.f32.mrf.mxu3 }
 0x136   :  { %v267_v21 = vadd.f32 %v266_v20, %v247_v19 }
 0x138   :  { %v309_v22 = vmax.f32 %v267_v21, 0.0 }
 0x13a   :  { %363 = vmatmul.f32.vlgmr.msrb.gmra.mxu2 %v309_v22 }
 0x1b7   :  { %v384_v26 = vpop.f32.mrf.mxu3 }
 0x1bd   :  { %v364_v24 = vpop.f32.mrf.mxu2 }
 0x1be   :  { %v365_v25 = vadd.f32 %v404_v23, %v364_v24 }
 0x1c0   :  { %v385_v27 = vadd.f32 %v384_v26, %v365_v25 }
 0x1c2   :  { %405 = vtanh.f32 %v385_v27 }
 0x1c8   :  { %v406_v29 = vpop.eup %405 }
 0x1c9   :  { %v389_v30 = vmul.f32 %v406_v29, %v388_v28 }
 0x1cb   :  { %390 = vst [vmem:[%s570_s8] sm:$0xff] %v389_v30 }
 0x1cc   :  { %395 = vsyncpa [#allocation4], 1 }
 0x1cd   :  { %396 = vsyncpa [#allocation6], 1 }

</bundles_post_ra>
